<compile_context>
chip_gen: v5e
topology: v5e:2x2
jax: 0.10.0
libtpu: 0.0.40
codegen_flags: <defaults>
</compile_context>

<pallas_src>
import functools

import jax
import jax.numpy as jnp
from jax import lax
from jax.experimental import pallas as pl
from jax.experimental.pallas import tpu as pltpu

NEG_BIG = 99999999.0  # same sentinel constant the PyTorch module uses


def _round_up(a, b):
    return ((a + b - 1) // b) * b


def _vmem_capacity_bytes():
    try:
        return int(pltpu.get_tpu_info().vmem_capacity_bytes)
    except Exception:
        return 64 * 1024 * 1024  # conservative (v7x-sized) fallback


# --------------------------------------------------------------------------------------
# Kernel 1: row-tiled L2 normalization (F.normalize(p=2, dim=1), eps=1e-12), output bf16.
# --------------------------------------------------------------------------------------
def _normalize_kernel(x_ref, xn_ref):
    x = x_ref[...]                                            # (B, Dp) f32
    sumsq = jnp.sum(x * x, axis=1, keepdims=True)             # (B, 1)
    # x * rsqrt(max(sumsq, 1e-24)) == x / max(||x||, 1e-12)  (one EUP op, no sqrt+div)
    xn_ref[...] = (x * lax.rsqrt(jnp.maximum(sumsq, 1e-24))).astype(xn_ref.dtype)


# --------------------------------------------------------------------------------------
# Kernel 2: tiled pairwise CosFace loss with a FUSED online dual logsumexp.
#   inputs : xr (block, Dp) bf16 row tile, xc bf16 column operand (a (block, Dp) stream
#            or the full VMEM-resident (n_pad, Dp) matrix), row labels (block,1) i32,
#            col labels (1,block) i32, column-validity bias (1,block) f32.
#   output : per-row softplus(neg_lse + pos_lse), zeroed for padded rows, shape (block,1)
#   scratch: running max / running sum for the neg and pos branches, each (block,1) f32
# --------------------------------------------------------------------------------------
def _pairwise_cosface_kernel(xr_ref, xc_ref, row_lbl_ref, col_lbl_ref, col_bias_ref,
                             sp_ref, m_neg, l_neg, m_pos, l_pos,
                             *, scale, margin, n_valid, block, col_resident):
    i = pl.program_id(0)            # row block  ("parallel")
    j = pl.program_id(1)            # col block  (reduction axis, last, "arbitrary")

    @pl.when(j == 0)
    def _init():
        neg_inf = jnp.full((block, 1), -jnp.inf, dtype=jnp.float32)
        zeros = jnp.zeros((block, 1), dtype=jnp.float32)
        m_neg[...] = neg_inf
        m_pos[...] = neg_inf
        l_neg[...] = zeros
        l_pos[...] = zeros

    if col_resident:
        # whole normalized matrix resident in VMEM: slice the current column block
        col0 = pl.multiple_of(j * block, block)
        xc = xc_ref[pl.ds(col0, block), :]
    else:
        xc = xc_ref[...]

    # (block, block) cosine-similarity tile: bf16 operands, f32 MXU accumulation.
    # Contract the last dims directly (A @ B^T) -> no transposed copy of xn anywhere.
    # TODO(synk): confirm via bundle dump that Mosaic lowers this without a per-tile
    # vxpose on the RHS; if it does, emit a transposed copy from the normalize kernel.
    sim = lax.dot_general(xr_ref[...], xc, (((1,), (1,)), ((), ())),
                          preferred_element_type=jnp.float32)

    same = row_lbl_ref[...] == col_lbl_ref[...]               # (block, block) bool

    # Branch scores share the sim*scale product (no f32 FMA on v6e -> reuse it).
    neg_val = sim * scale + (margin * scale)                  # (sim + m) * s
    pos_val = (margin * scale) - neg_val                      # == -sim * s

    # Combined score tile: pos value where labels match, neg value elsewhere; padded
    # columns get the precomputed -NEG_BIG additive bias; self pairs forced to -NEG_BIG.
    sc = jnp.where(same, pos_val, neg_val) + col_bias_ref[...]
    # self-pair exclusion, cheap local form: row_g == col_g  <=>  (r - c) == (j - i)*block
    # (kept unconditional: a few int32 VPU ops per tile, small next to the exp stream)
    rc = (lax.broadcasted_iota(jnp.int32, (block, block), 0)
          - lax.broadcasted_iota(jnp.int32, (block, block), 1))
    sc = jnp.where(rc != (j - i) * block, sc, -NEG_BIG)

    # ---- fused online dual logsumexp: per-branch maxima, ONE exp, masked sum split ----
    m_pos_prev = m_pos[...]
    m_neg_prev = m_neg[...]
    m_pos_new = jnp.maximum(
        m_pos_prev, jnp.max(jnp.where(same, sc, -NEG_BIG), axis=1, keepdims=True))
    m_neg_new = jnp.maximum(
        m_neg_prev, jnp.max(jnp.where(same, -NEG_BIG, sc), axis=1, keepdims=True))

    # single EUP stream over the full tile (pos entries shifted by m_pos, neg by m_neg)
    # TODO(synk): on v6e/v7x try exp on a bf16 cast of the shifted scores if a bundle
    # dump still shows the EUP slot saturated (NOT on v5e: no bf16 EUP/VPU).
    e = jnp.exp(sc - jnp.where(same, m_pos_new, m_neg_new))

    l_pos[...] = (jnp.exp(m_pos_prev - m_pos_new) * l_pos[...]
                  + jnp.sum(jnp.where(same, e, 0.0), axis=1, keepdims=True))
    l_neg[...] = (jnp.exp(m_neg_prev - m_neg_new) * l_neg[...]
                  + jnp.sum(jnp.where(same, 0.0, e), axis=1, keepdims=True))
    m_pos[...] = m_pos_new
    m_neg[...] = m_neg_new

    @pl.when(j == pl.num_programs(1) - 1)
    def _finalize():
        z = (m_neg[...] + jnp.log(l_neg[...])) + (m_pos[...] + jnp.log(l_pos[...]))
        # numerically stable softplus; z may be -inf (row with no pos/neg pairs) -> 0
        sp = jnp.maximum(z, 0.0) + jnp.log1p(jnp.exp(-jnp.abs(z)))
        row_ids = i * block + lax.broadcasted_iota(jnp.int32, (block, 1), 0)
        sp_ref[...] = jnp.where(row_ids < n_valid, sp, 0.0)


# --------------------------------------------------------------------------------------
# Wrapper
# --------------------------------------------------------------------------------------
def pairwise_cosface_loss(inputs, targets, scale=16.0, margin=0.1,
                          block=None, col_resident=None):
    """inputs: (N, D) float; targets: (N,) int labels. Returns scalar f32 loss."""
    n, d = inputs.shape
    d_pad = _round_up(d, 128)

    vmem_cap = _vmem_capacity_bytes()
    big_vmem = vmem_cap >= 100 * 1024 * 1024   # 128 MiB parts (v5e/v6e) vs 64 MiB (v7x)
    vmem_limit = (64 if big_vmem else 40) * 1024 * 1024
    two_tc = not big_vmem                      # proxy: the 64 MiB generation has 2 TCs/chip

    # ---- tile-size policy ----
    if block is None:
        block = 512 if big_vmem else 256
    block = max(128, _round_up(block, 128))
    block = min(block, _round_up(n, 128))      # don't over-pad tiny batches

    def _streamed_step_bytes(b):
        # 2 double-buffered bf16 (b, d_pad) operand streams + f32 tile temporaries + slack
        return 2 * (2 * b * d_pad * 2) + 8 * b * b * 4 + (1 << 20)

    while block > 128 and _streamed_step_bytes(block) > vmem_limit:
        block -= 128
    if two_tc:
        # make the "parallel" row axis span both TensorCores when N allows it
        while block > 128 and _round_up(n, block) // block < 2:
            block -= 128

    n_pad = _round_up(n, block)
    r_blocks = n_pad // block

    # keep the whole column operand VMEM-resident when it (plus the row stream) fits
    resident_fits = (n_pad * d_pad * 2 + 2 * block * d_pad * 2
                     + 8 * block * block * 4 + (2 << 20)) <= vmem_limit
    if col_resident is None:
        col_resident = resident_fits
    col_resident = bool(col_resident) and resident_fits

    x_pad = jnp.pad(inputs.astype(jnp.float32), ((0, n_pad - n), (0, d_pad - d)))
    t_pad = jnp.pad(targets.astype(jnp.int32), (0, n_pad - n), constant_values=-1)

    # ---- pass 1: normalize once, store bf16 (halves MXU-operand HBM/VMEM traffic) ----
    norm_block = 128
    for cand in (512, 384, 256, 128):
        if n_pad % cand == 0 and 2 * cand * d_pad * (4 + 2) + (1 << 20) <= vmem_limit:
            norm_block = cand
            break
    xn = pl.pallas_call(
        _normalize_kernel,
        out_shape=jax.ShapeDtypeStruct((n_pad, d_pad), jnp.bfloat16),
        grid_spec=pltpu.PrefetchScalarGridSpec(
            num_scalar_prefetch=0,
            grid=(n_pad // norm_block,),
            in_specs=[pl.BlockSpec((norm_block, d_pad), lambda i: (i, 0))],
            out_specs=pl.BlockSpec((norm_block, d_pad), lambda i: (i, 0)),
        ),
        compiler_params=pltpu.CompilerParams(
            dimension_semantics=("parallel",),
            vmem_limit_bytes=vmem_limit,
        ),
    )(x_pad)

    t_col = t_pad.reshape(n_pad, 1)               # labels for row tiles
    t_row = t_pad.reshape(1, n_pad)               # labels for col tiles
    # additive column-validity bias: 0 for real columns, -NEG_BIG for padded columns
    col_bias = jnp.where(jnp.arange(n_pad) < n, 0.0, -NEG_BIG)
    col_bias = col_bias.astype(jnp.float32).reshape(1, n_pad)

    # ---- pass 2: tiled pairwise loss ----
    def _run(resident):
        kernel = functools.partial(
            _pairwise_cosface_kernel,
            scale=float(scale), margin=float(margin), n_valid=n, block=block,
            col_resident=resident)
        if resident:
            # full column operand resident in VMEM: DMA'd once, never re-streamed
            col_spec = pl.BlockSpec((n_pad, d_pad), lambda i, j: (0, 0),
                                    pipeline_mode=pl.Buffered(1))
        else:
            # TODO(synk): consider pipeline_mode=pl.Buffered(3) here if DMA is still
            # exposed at small D on the streamed path (per perf review).
            col_spec = pl.BlockSpec((block, d_pad), lambda i, j: (j, 0))
        return pl.pallas_call(
            kernel,
            out_shape=jax.ShapeDtypeStruct((n_pad, 1), jnp.float32),
            grid_spec=pltpu.PrefetchScalarGridSpec(
                num_scalar_prefetch=0,
                grid=(r_blocks, r_blocks),
                in_specs=[
                    pl.BlockSpec((block, d_pad), lambda i, j: (i, 0)),   # xn row tile
                    col_spec,                                            # xn column operand
                    pl.BlockSpec((block, 1), lambda i, j: (i, 0)),       # row-tile labels
                    pl.BlockSpec((1, block), lambda i, j: (0, j)),       # col-tile labels
                    pl.BlockSpec((1, block), lambda i, j: (0, j)),       # col-validity bias
                ],
                out_specs=pl.BlockSpec((block, 1), lambda i, j: (i, 0)),
                scratch_shapes=[pltpu.VMEM((block, 1), jnp.float32)] * 4,
            ),
            compiler_params=pltpu.CompilerParams(
                dimension_semantics=("parallel", "arbitrary"),
                vmem_limit_bytes=vmem_limit,
            ),
        )(xn, xn, t_col, t_row, col_bias)

    if col_resident:
        try:
            sp = _run(True)
        except Exception:   # conservative fallback if the resident variant fails to lower
            sp = _run(False)
    else:
        sp = _run(False)

    # tiny O(N) epilogue: padded rows were written as exactly 0
    return jnp.sum(sp) / n


# --------------------------------------------------------------------------------------
# Reference for verification (pure-JAX mirror of the PyTorch forward)
# --------------------------------------------------------------------------------------
def _reference_loss(inputs, targets, scale=16.0, margin=0.1, sim_dtype=jnp.float32):
    """sim_dtype=bfloat16 mirrors the kernel's bf16 MXU operands (f32 accumulation)."""
    x = inputs.astype(jnp.float32)
    x = x * lax.rsqrt(jnp.maximum(jnp.sum(x * x, axis=1, keepdims=True), 1e-24))
    xs = x.astype(sim_dtype)
    sim = jnp.dot(xs, xs.T, preferred_element_type=jnp.float32)
    t = targets.reshape(-1, 1)
    mask = (t == t.T).astype(jnp.float32)
    eye = jnp.eye(t.shape[0], dtype=jnp.float32)
    mask_pos = mask - eye
    mask_neg = 1.0 - mask
    scores = ((sim + margin) * mask_neg - sim * mask_pos) * scale
    neg_lse = jax.nn.logsumexp(scores * mask_neg - NEG_BIG * (1.0 - mask_neg), axis=1)
    pos_lse = jax.nn.logsumexp(scores * mask_pos - NEG_BIG * (1.0 - mask_pos), axis=1)
    return jnp.mean(jax.nn.softplus(neg_lse + pos_lse))


if __name__ == "__main__":
    key = jax.random.PRNGKey(0)
    k1, k2, k3 = jax.random.split(key, 3)

    # batch of 8 embeddings, 32-dim features (labels repeated -> every row has a positive)
    N, D = 8, 32
    inputs = jax.random.normal(k1, (N, D), dtype=jnp.float32)
    targets = jnp.array([0, 0, 1, 1, 2, 2, 3, 3], dtype=jnp.int32)

    loss = jax.block_until_ready(pairwise_cosface_loss(inputs, targets, 16.0, 0.1))

    ref_bf16 = _reference_loss(inputs, targets, 16.0, 0.1, sim_dtype=jnp.bfloat16)
    ref_f32 = _reference_loss(inputs, targets, 16.0, 0.1, sim_dtype=jnp.float32)
    assert jnp.allclose(loss, ref_bf16, atol=5e-4, rtol=5e-4), (loss, ref_bf16)
    assert jnp.allclose(loss, ref_f32, atol=5e-2, rtol=5e-2), (loss, ref_f32)

    # forced-streamed column operand (exercises the non-resident path)
    loss_s = jax.block_until_ready(
        pairwise_cosface_loss(inputs, targets, 16.0, 0.1, col_resident=False))
    assert jnp.allclose(loss_s, loss, atol=1e-5, rtol=1e-5), (loss_s, loss)

    # rows with no positive pair (unique labels) must stay finite and match the reference
    targets_u = jnp.array([0, 0, 1, 1, 2, 2, 3, 4], dtype=jnp.int32)
    loss_u = jax.block_until_ready(pairwise_cosface_loss(inputs, targets_u, 16.0, 0.1))
    ref_u = _reference_loss(inputs, targets_u, 16.0, 0.1, sim_dtype=jnp.bfloat16)
    assert bool(jnp.isfinite(loss_u)), loss_u
    assert jnp.allclose(loss_u, ref_u, atol=5e-4, rtol=5e-4), (loss_u, ref_u)

    # multi-tile grid (online accumulation across column blocks), streamed path
    N2, D2 = 300, 96
    inputs2 = jax.random.normal(k2, (N2, D2), dtype=jnp.float32)
    targets2 = jax.random.randint(k3, (N2,), 0, 80, dtype=jnp.int32)
    loss2 = jax.block_until_ready(
        pairwise_cosface_loss(inputs2, targets2, 16.0, 0.1, block=128, col_resident=False))
    ref2 = _reference_loss(inputs2, targets2, 16.0, 0.1, sim_dtype=jnp.bfloat16)
    assert jnp.allclose(loss2, ref2, atol=2e-3, rtol=2e-3), (loss2, ref2)

    print("KERNEL_OK")
</pallas_src>

<mosaic_0001>
module attributes {stable_mosaic.version = 11 : i64} {
  func.func @_normalize_kernel(%arg0: i32, %arg1: memref<128x128xf32, #tpu.memory_space<vmem>>, %arg2: memref<128x128xbf16, #tpu.memory_space<vmem>>) attributes {dimension_semantics = [#tpu.dimension_semantics<parallel>], iteration_bounds = array<i64: 1>, scalar_prefetch = 0 : i64, scratch_operands = 0 : i64, tpu.core_type = #tpu.core_type<tc>, window_params = [{transform_indices = @transform_0, window_bounds = array<i64: 128, 128>}, {transform_indices = @transform_1, window_bounds = array<i64: 128, 128>}]} {
    %c0 = arith.constant 0 : index
    %c0_0 = arith.constant 0 : index
    %0 = vector.load %arg1[%c0, %c0_0] : memref<128x128xf32, #tpu.memory_space<vmem>>, vector<128x128xf32>
    %1 = arith.mulf %0, %0 : vector<128x128xf32>
    %cst = arith.constant dense<0.000000e+00> : vector<128xf32>
    %2 = vector.multi_reduction <add>, %1, %cst [1] : vector<128x128xf32> to vector<128xf32>
    %3 = vector.shape_cast %2 : vector<128xf32> to vector<128x1xf32>
    %cst_1 = arith.constant 1.000000e-24 : f32
    %4 = vector.broadcast %cst_1 : f32 to vector<128x1xf32>
    %5 = arith.maximumf %3, %4 : vector<128x1xf32>
    %6 = math.rsqrt %5 : vector<128x1xf32>
    %7 = vector.broadcast %6 : vector<128x1xf32> to vector<128x128xf32>
    %8 = arith.mulf %0, %7 : vector<128x128xf32>
    %9 = arith.truncf %8 : vector<128x128xf32> to vector<128x128xbf16>
    %c0_2 = arith.constant 0 : index
    %c0_3 = arith.constant 0 : index
    %10 = vector.load %arg2[%c0_2, %c0_3] : memref<128x128xbf16, #tpu.memory_space<vmem>>, vector<128x128xbf16>
    tpu.vector_store %arg2[%c0_2, %c0_3], %9 {strides = array<i32>} : memref<128x128xbf16, #tpu.memory_space<vmem>>, vector<128x128xbf16>,
    return
  }
  func.func @transform_0(%arg0: i32) -> (i32, i32) {
    %c0_i32 = arith.constant 0 : i32
    %c0_i32_0 = arith.constant 0 : i32
    return %arg0, %c0_i32 : i32, i32
  }
  func.func @transform_1(%arg0: i32) -> (i32, i32) {
    %c0_i32 = arith.constant 0 : i32
    %c0_i32_0 = arith.constant 0 : i32
    return %arg0, %c0_i32 : i32, i32
  }
}

</mosaic_0001>

<bundles_post_ra>
// kernel: tpu_custom_call.1
= control target key start
LH: loop header
LB: loop body
LE: loop exit
PB: predicated region body
PF: predicated region fallthrough
CT: control target
= control target key end

     0   :  { %6 = vsyncpa [#allocation3], 0  ;;  %s784_s0 = inlined_call_operand.hbm [shape: f32[128,128], index: 0, kind: input, shape index: {}]   ;;  %s785_s1 = inlined_call_operand.hbm [shape: bf16[128,128], index: 1, kind: output, shape index: {}]  }
   0x1   :  { %7 = vsyncpa [#allocation4], 0  ;;  %s12_s8 = sshll.u32 %s784_s0, 4  ;;  %s469_s9 = smov [#allocation2]   ;;  %s13_s8 = int_to_ptr.hbm [resolvable:$true] %s12_s8 }
   0x2   :  { %s14_s10 = sshll.u32 %s469_s9, 4  ;;  %s470_s11 = smov 128   ;;  %s15_s10 = int_to_ptr.vmem [resolvable:$true] %s14_s10 }
   0x3   :  { %s471_s12 = smov 8  }
   0x4   :  { %20 = dma.hbm_to_vmem [thread:$0]  %s13_s8, 2048, %s15_s10, [#allocation3], %s470_s11, %s470_s11, %s471_s12  }
   0x5   :  { %465 = dma.done.wait [#allocation3], 2048  }
   0x6   :  { %466 = vsyncadd [#allocation3], 4294965248  ;;  %v488_v0 = vld [vmem:[#allocation2 + $0x20] sm:$0xff]  ;;  %v490_v1 = vld [vmem:[#allocation2 + $0x10] sm:$0xff]  ;;  %s472_s0 = smov [#allocation5]   ;;  %s319_s16 = sshll.u32 %s785_s1, 4  ;;  %s320_s16 = int_to_ptr.hbm [resolvable:$true] %s319_s16 }
   0x7   :  { %v492_v2 = vld [vmem:[#allocation2] sm:$0xff]  ;;  %v45_v3 = vmul.f32 %v488_v0, %v488_v0  ;;  %v43_v4 = vmul.f32 %v490_v1, %v490_v1  ;;  %v500_v6 = vld [vmem:[#allocation2 + $0x28] sm:$0xff]  ;;  %v502_v7 = vld [vmem:[#allocation2 + $0x18] sm:$0xff]  ;;  %s317_s13 = sshll.u32 %s472_s0, 4  ;;  %s473_s17 = smov 64   ;;  %s318_s13 = int_to_ptr.vmem [resolvable:$true] %s317_s13 }
   0x8   :  { %v41_v5 = vmul.f32 %v492_v2, %v492_v2  ;;  %v504_v8 = vld [vmem:[#allocation2 + $0x8] sm:$0xff]  ;;  %v46_v9 = vmul.f32 %v500_v6, %v500_v6  ;;  %v44_v10 = vmul.f32 %v502_v7, %v502_v7  ;;  %v512_v12 = vld [vmem:[#allocation2 + $0x40] sm:$0xff]  ;;  %v514_v13 = vld [vmem:[#allocation2 + $0x38] sm:$0xff]  ;;  %s474_s18 = smov 4  }
   0x9   :  { %65 = vadd.xlane.f32.xlu2 %v45_v3  ;;  %61 = vadd.xlane.f32.xlu1 %v43_v4  ;;  %v42_v11 = vmul.f32 %v504_v8, %v504_v8  ;;  %v516_v14 = vld [vmem:[#allocation2 + $0x30] sm:$0xff]  ;;  %v49_v15 = vmul.f32 %v512_v12, %v512_v12  ;;  %v48_v16 = vmul.f32 %v514_v13, %v514_v13  ;;  %v524_v18 = vld [vmem:[#allocation2 + $0x58] sm:$0xff]  ;;  %v528_v20 = vld [vmem:[#allocation2 + $0x48] sm:$0xff] }
   0xa   :  { %57 = vadd.xlane.f32.xlu0 %v41_v5  ;;  %v47_v17 = vmul.f32 %v516_v14, %v516_v14  ;;  %v526_v19 = vld [vmem:[#allocation2 + $0x50] sm:$0xff]  ;;  %v52_v21 = vmul.f32 %v524_v18, %v524_v18  ;;  %v50_v23 = vmul.f32 %v528_v20, %v528_v20  ;;  %v538_v25 = vld [vmem:[#allocation2 + $0x68] sm:$0xff]  ;;  %v540_v26 = vld [vmem:[#allocation2 + $0x60] sm:$0xff] }
   0xb   :  { %v51_v22 = vmul.f32 %v526_v19, %v526_v19  ;;  %v536_v24 = vld [vmem:[#allocation2 + $0x70] sm:$0xff]  ;;  %v54_v28 = vmul.f32 %v538_v25, %v538_v25  ;;  %v53_v29 = vmul.f32 %v540_v26, %v540_v26  ;;  %v548_v30 = vld [vmem:[#allocation2 + $0x78] sm:$0xff] }
   0xc   :  { %v55_v27 = vmul.f32 %v536_v24, %v536_v24  ;;  %v56_v31 = vmul.f32 %v548_v30, %v548_v30 }
  0x11   :  { %67 = vadd.xlane.f32.xlu2 %v46_v9  ;;  %63 = vadd.xlane.f32.xlu1 %v44_v10 }
  0x12   :  { %59 = vadd.xlane.f32.xlu0 %v42_v11 }
  0x19   :  { %73 = vadd.xlane.f32.xlu2 %v49_v15  ;;  %71 = vadd.xlane.f32.xlu1 %v48_v16 }
  0x1a   :  { %69 = vadd.xlane.f32.xlu0 %v47_v17 }
  0x21   :  { %79 = vadd.xlane.f32.xlu2 %v52_v21  ;;  %77 = vadd.xlane.f32.xlu1 %v51_v22 }
  0x22   :  { %75 = vadd.xlane.f32.xlu0 %v50_v23 }
  0x29   :  { %85 = vadd.xlane.f32.xlu2 %v55_v27  ;;  %83 = vadd.xlane.f32.xlu1 %v54_v28 }
  0x2a   :  { %81 = vadd.xlane.f32.xlu0 %v53_v29 }
  0x32   :  { %87 = vadd.xlane.f32.xlu0 %v56_v31 }
  0x7c   :  { %v66_v32 = vpop.xlane.xlu2 %65  ;;  %v62_v33 = vpop.xlane.xlu1 %61 }
  0x7d   :  { %v93_v34 = vmax.f32 %v66_v32, 1e-24  ;;  %v552_v35 = vmax.f32 %v62_v33, 1e-24  ;;  %v58_v36 = vpop.xlane.xlu0 %57 }
  0x7e   :  { %v554_v37 = vmax.f32 %v58_v36, 1e-24 }
  0x7f   :  { %385 = vrsqrt.f32 %v93_v34  ;;  %vm151_vm0 = vweird.f32 %v93_v34  ;;  %vm131_vm1 = vweird.f32 %v552_v35 }
  0x80   :  { %387 = vrsqrt.f32 %v552_v35  ;;  %vm111_vm3 = vweird.f32 %v554_v37 }
  0x81   :  { %389 = vrsqrt.f32 %v554_v37 }
  0x84   :  { %v68_v38 = vpop.xlane.xlu2 %67  ;;  %v64_v39 = vpop.xlane.xlu1 %63 }
  0x85   :  { %v558_v40 = vpop.eup %385  ;;  %v560_v41 = vmax.f32 %v68_v38, 1e-24  ;;  %v562_v42 = vmax.f32 %v64_v39, 1e-24  ;;  %v60_v43 = vpop.xlane.xlu0 %59 }
  0x86   :  { %v564_v44 = vpop.eup %387  ;;  %v146_v45 = vmul.f32 %v558_v40, %v93_v34  ;;  %v567_v46 = vmax.f32 %v60_v43, 1e-24  ;;  %vm152_vm2 = vweird.f32 %v558_v40 }
  0x87   :  { %v569_v47 = vpop.eup %389  ;;  %v126_v48 = vmul.f32 %v564_v44, %v552_v35  ;;  %391 = vrsqrt.f32 %v560_v41  ;;  %vm132_vm4 = vweird.f32 %v564_v44  ;;  %vm161_vm5 = vweird.f32 %v560_v41  ;;  %vm613_vm10 = vmor %vm151_vm0, %vm152_vm2 }
  0x88   :  { %v147_v49 = vmul.f32 %v558_v40, %v146_v45  ;;  %v106_v50 = vmul.f32 %v569_v47, %v554_v37  ;;  %393 = vrsqrt.f32 %v562_v42  ;;  %vm112_vm6 = vweird.f32 %v569_v47  ;;  %vm629_vm12 = vmor %vm131_vm1, %vm132_vm4 }
  0x89   :  { %v127_v51 = vmul.f32 %v564_v44, %v126_v48  ;;  %395 = vrsqrt.f32 %v567_v46  ;;  %vm141_vm7 = vweird.f32 %v562_v42  ;;  %vm121_vm8 = vweird.f32 %v567_v46  ;;  %vm644_vm13 = vmor %vm111_vm3, %vm112_vm6 }
  0x8a   :  { %v148_v52 = vmul.f32 0.5, %v147_v49  ;;  %v107_v53 = vmul.f32 %v569_v47, %v106_v50 }
  0x8b   :  { %v128_v54 = vmul.f32 0.5, %v127_v51 }
  0x8c   :  { %v108_v55 = vmul.f32 0.5, %v107_v53  ;;  %v74_v56 = vpop.xlane.xlu2 %73  ;;  %v72_v57 = vpop.xlane.xlu1 %71  ;;  %v149_v59 = vsub.f32 1.5, %v148_v52 }
  0x8d   :  { %v581_v58 = vpop.eup %391  ;;  %v584_v60 = vmax.f32 %v74_v56, 1e-24  ;;  %v70_v61 = vpop.xlane.xlu0 %69  ;;  %v129_v63 = vsub.f32 1.5, %v128_v54  ;;  %v595_v10 = vmax.f32 %v72_v57, 1e-24 }
  0x8e   :  { %v586_v62 = vpop.eup %393  ;;  %v156_v3 = vmul.f32 %v581_v58, %v560_v41  ;;  %v109_v5 = vsub.f32 1.5, %v108_v55  ;;  %v150_v16 = vmul.f32 %v558_v40, %v149_v59  ;;  %vm162_vm9 = vweird.f32 %v581_v58 }
  0x8f   :  { %v396_v4 = vpop.eup %395  ;;  %v136_v9 = vmul.f32 %v586_v62, %v562_v42  ;;  %397 = vrsqrt.f32 %v584_v60  ;;  %v130_v21 = vmul.f32 %v564_v44, %v129_v63  ;;  %vm142_vm11 = vweird.f32 %v586_v62  ;;  %vm163_vm15 = vmor %vm161_vm5, %vm162_vm9 }
  0x90   :  { %v157_v11 = vmul.f32 %v581_v58, %v156_v3  ;;  %v116_v15 = vmul.f32 %v396_v4, %v567_v46  ;;  %v110_v27 = vmul.f32 %v569_v47, %v109_v5  ;;  %399 = vrsqrt.f32 %v595_v10  ;;  %vm143_vm0 = vmor %vm141_vm7, %vm142_vm11 }
  0x91   :  { %v137_v17 = vmul.f32 %v586_v62, %v136_v9  ;;  %v618_v33 = vmax.f32 %v70_v61, 1e-24  ;;  %v154_v43 = vsel %vm613_vm10, %v558_v40, %v150_v16  ;;  %v134_v51 = vsel %vm629_vm12, %v564_v44, %v130_v21 }
  0x92   :  { %v158_v22 = vmul.f32 0.5, %v157_v11  ;;  %v117_v23 = vmul.f32 %v396_v4, %v116_v15  ;;  %vm122_vm14 = vweird.f32 %v396_v4  ;;  %v114_v53 = vsel %vm644_vm13, %v569_v47, %v110_v27 }
  0x93   :  { %v138_v28 = vmul.f32 0.5, %v137_v17  ;;  %401 = vrsqrt.f32 %v618_v33  ;;  %v269_v54 = vmul.f32 %v154_v43, %v488_v0  ;;  %v267_v56 = vmul.f32 %v134_v51, %v490_v1  ;;  %vm123_vm1 = vmor %vm121_vm8, %vm122_vm14 }
  0x94   :  { %v159_v31 = vsub.f32 1.5, %v158_v22  ;;  %v118_v32 = vmul.f32 0.5, %v117_v23  ;;  %v80_v36 = vpop.xlane.xlu2 %79  ;;  %v78_v38 = vpop.xlane.xlu1 %77  ;;  %v265_v0 = vmul.f32 %v114_v53, %v492_v2  ;;  %vm181_vm2 = vweird.f32 %v595_v10 }
  0x95   :  { %v620_v39 = vpop.eup %397  ;;  %v139_v45 = vsub.f32 1.5, %v138_v28  ;;  %v633_v48 = vmax.f32 %v80_v36, 1e-24  ;;  %v635_v49 = vmax.f32 %v78_v38, 1e-24  ;;  %v76_v50 = vpop.xlane.xlu0 %75  ;;  %vm171_vm3 = vweird.f32 %v618_v33 }
  0x96   :  { %v160_v40 = vmul.f32 %v581_v58, %v159_v31  ;;  %v119_v52 = vsub.f32 1.5, %v118_v32  ;;  %v186_v37 = vmul.f32 %v620_v39, %v584_v60  ;;  %v667_v41 = vpop.eup %399  ;;  %vm191_vm4 = vweird.f32 %v584_v60 }
  0x97   :  { %v140_v44 = vmul.f32 %v586_v62, %v139_v45  ;;  %403 = vrsqrt.f32 %v633_v48  ;;  %v176_v61 = vmul.f32 %v667_v41, %v595_v10  ;;  %vm192_vm5 = vweird.f32 %v620_v39 }
  0x98   :  { %v164_v55 = vsel %vm163_vm15, %v581_v58, %v160_v40  ;;  %v120_v47 = vmul.f32 %v396_v4, %v119_v52  ;;  %405 = vrsqrt.f32 %v635_v49  ;;  %vm182_vm6 = vweird.f32 %v667_v41 }
  0x99   :  { %v270_v57 = vmul.f32 %v164_v55, %v500_v6  ;;  %v144_v59 = vsel %vm143_vm0, %v586_v62, %v140_v44  ;;  %v187_v6 = vmul.f32 %v620_v39, %v186_v37  ;;  %v682_v62 = vmax.f32 %v76_v50, 1e-24  ;;  %v685_v9 = vpop.eup %401  ;;  %vm714_vm9 = vmor %vm181_vm2, %vm182_vm6 }
  0x9a   :  { %v268_v42 = vmul.f32 %v144_v59, %v502_v7  ;;  %v124_v58 = vsel %vm123_vm1, %v396_v4, %v120_v47  ;;  %v177_v46 = vmul.f32 %v667_v41, %v176_v61  ;;  %v166_v15 = vmul.f32 %v685_v9, %v618_v33  ;;  %vm756_vm1 = vmor %vm191_vm4, %vm192_vm5 }
  0x9b   :  { %v345_v63 = vpack.c.bf16 %v270_v57, %v269_v54  ;;  %v266_v1 = vmul.f32 %v124_v58, %v504_v8  ;;  %407 = vrsqrt.f32 %v682_v62  ;;  %v188_v21 = vmul.f32 0.5, %v187_v6 }
  0x9c   :  { %v340_v3 = vpack.c.bf16 %v268_v42, %v267_v56  ;;  %v86_v5 = vpop.xlane.xlu2 %85  ;;  %v178_v8 = vmul.f32 0.5, %v177_v46  ;;  %v84_v16 = vpop.xlane.xlu1 %83  ;;  %v167_v27 = vmul.f32 %v685_v9, %v166_v15  ;;  %vm221_vm7 = vweird.f32 %v633_v48 }
  0x9d   :  { %373 = vst [vmem:[#allocation5 + $0x10] sm:$0xff] %v345_v63   ;;  %v335_v2 = vpack.c.bf16 %v266_v1, %v265_v0  ;;  %v688_v7 = vmax.f32 %v86_v5, 1e-24  ;;  %v82_v4 = vpop.xlane.xlu0 %81  ;;  %v404_v11 = vpop.eup %403  ;;  %vm211_vm8 = vweird.f32 %v635_v49  ;;  %v706_v31 = vmax.f32 %v84_v16, 1e-24 }
  0x9e   :  { %372 = vst [vmem:[#allocation5 + $0x8] sm:$0xff] %v340_v3   ;;  %v693_v17 = vpop.eup %405  ;;  %v216_v22 = vmul.f32 %v404_v11, %v633_v48  ;;  %v179_v23 = vsub.f32 1.5, %v178_v8  ;;  %v168_v36 = vmul.f32 0.5, %v167_v27  ;;  %v710_v43 = vmax.f32 %v82_v4, 1e-24 }
  0x9f   :  { %336 = vst [vmem:[#allocation5] sm:$0xff] %v335_v2   ;;  %409 = vrsqrt.f32 %v688_v7  ;;  %v206_v28 = vmul.f32 %v693_v17, %v635_v49  ;;  %v189_v45 = vsub.f32 1.5, %v188_v21  ;;  %vm172_vm10 = vweird.f32 %v685_v9 }
  0xa0   :  { %v217_v29 = vmul.f32 %v404_v11, %v216_v22  ;;  %v180_v32 = vmul.f32 %v667_v41, %v179_v23  ;;  %411 = vrsqrt.f32 %v706_v31  ;;  %v169_v40 = vsub.f32 1.5, %v168_v36  ;;  %vm173_vm13 = vmor %vm171_vm3, %vm172_vm10 }
  0xa1   :  { %v207_v38 = vmul.f32 %v693_v17, %v206_v28  ;;  %v408_v34 = vpop.eup %407  ;;  %vm222_vm11 = vweird.f32 %v404_v11  ;;  %vm212_vm12 = vweird.f32 %v693_v17  ;;  %413 = vrsqrt.f32 %v710_v43 }
  0xa2   :  { %v218_v51 = vmul.f32 0.5, %v217_v29  ;;  %v184_v35 = vsel %vm714_vm9, %v667_v41, %v180_v32  ;;  %v196_v53 = vmul.f32 %v408_v34, %v682_v62  ;;  %v170_v54 = vmul.f32 %v685_v9, %v169_v40  ;;  %vm223_vm14 = vmor %vm221_vm7, %vm222_vm11 }
  0xa3   :  { %v208_v52 = vmul.f32 0.5, %v207_v38  ;;  %v190_v56 = vmul.f32 %v620_v39, %v189_v45  ;;  %v272_v57 = vmul.f32 %v184_v35, %v514_v13  ;;  %vm213_vm15 = vmor %vm211_vm8, %vm212_vm12  ;;  %vm202_vm0 = vweird.f32 %v408_v34 }
  0xa4   :  { %v219_v10 = vsub.f32 1.5, %v218_v51  ;;  %v197_v47 = vmul.f32 %v408_v34, %v196_v53  ;;  %v174_v42 = vsel %vm173_vm13, %v685_v9, %v170_v54  ;;  %vm201_vm2 = vweird.f32 %v682_v62 }
  0xa5   :  { %v724_v44 = vpop.eup %409  ;;  %v88_v37 = vpop.xlane.xlu0 %87  ;;  %v209_v55 = vsub.f32 1.5, %v208_v52  ;;  %v271_v13 = vmul.f32 %v174_v42, %v516_v14  ;;  %v194_v9 = vsel %vm756_vm1, %v620_v39, %v190_v56  ;;  %vm203_vm3 = vmor %vm201_vm2, %vm202_vm0  ;;  %vm241_vm4 = vweird.f32 %v706_v31 }
  0xa6   :  { %v246_v41 = vmul.f32 %v724_v44, %v688_v7  ;;  %v220_v59 = vmul.f32 %v404_v11, %v219_v10  ;;  %v737_v0 = vmax.f32 %v88_v37, 1e-24  ;;  %v198_v61 = vmul.f32 0.5, %v197_v47  ;;  %v412_v1 = vpop.eup %411 }
  0xa7   :  { %v210_v58 = vmul.f32 %v693_v17, %v209_v55  ;;  %v414_v46 = vpop.eup %413  ;;  %v350_v5 = vpack.c.bf16 %v272_v57, %v271_v13  ;;  %vm242_vm5 = vweird.f32 %v412_v1  ;;  %vm251_vm7 = vweird.f32 %v688_v7 }
  0xa8   :  { %v247_v63 = vmul.f32 %v724_v44, %v246_v41  ;;  %v224_v6 = vsel %vm223_vm14, %v404_v11, %v220_v59  ;;  %415 = vrsqrt.f32 %v737_v0  ;;  %v199_v3 = vsub.f32 1.5, %v198_v61  ;;  %vm243_vm9 = vmor %vm241_vm4, %vm242_vm5 }
  0xa9   :  { %v276_v33 = vmul.f32 %v224_v6, %v524_v18  ;;  %v214_v48 = vsel %vm213_vm15, %v693_v17, %v210_v58  ;;  %v236_v18 = vmul.f32 %v412_v1, %v706_v31  ;;  %v226_v11 = vmul.f32 %v414_v46, %v710_v43  ;;  %374 = vst [vmem:[#allocation5 + $0x18] sm:$0xff] %v350_v5  }
  0xaa   :  { %v275_v49 = vmul.f32 %v214_v48, %v526_v19  ;;  %v200_v2 = vmul.f32 %v408_v34, %v199_v3  ;;  %v248_v4 = vmul.f32 0.5, %v247_v63  ;;  %v273_v19 = vmul.f32 %v194_v9, %v512_v12 }
  0xab   :  { %v237_v8 = vmul.f32 %v412_v1, %v236_v18  ;;  %v227_v16 = vmul.f32 %v414_v46, %v226_v11  ;;  %vm232_vm6 = vweird.f32 %v414_v46  ;;  %vm252_vm8 = vweird.f32 %v724_v44 }
  0xac   :  { %v360_v60 = vpack.c.bf16 %v276_v33, %v275_v49  ;;  %v204_v15 = vsel %vm203_vm3, %v408_v34, %v200_v2  ;;  %v249_v22 = vsub.f32 1.5, %v248_v4  ;;  %vm231_vm10 = vweird.f32 %v710_v43  ;;  %vm253_vm13 = vmor %vm251_vm7, %vm252_vm8 }
  0xad   :  { %v274_v62 = vmul.f32 %v204_v15, %v528_v20  ;;  %v238_v21 = vmul.f32 0.5, %v237_v8  ;;  %v228_v23 = vmul.f32 0.5, %v227_v16  ;;  %vm233_vm11 = vmor %vm231_vm10, %vm232_vm6  ;;  %vm261_vm14 = vweird.f32 %v737_v0 }
  0xae   :  { %v416_v17 = vpop.eup %415  ;;  %376 = vst [vmem:[#allocation5 + $0x28] sm:$0xff] %v360_v60   ;;  %v250_v20 = vmul.f32 %v724_v44, %v249_v22 }
  0xaf   :  { %v256_v39 = vmul.f32 %v416_v17, %v737_v0  ;;  %v355_v27 = vpack.c.bf16 %v274_v62, %v273_v19  ;;  %v239_v28 = vsub.f32 1.5, %v238_v21  ;;  %v229_v29 = vsub.f32 1.5, %v228_v23 }
  0xb0   :  { %vm262_vm12 = vweird.f32 %v416_v17  ;;  %v254_v51 = vsel %vm253_vm13, %v724_v44, %v250_v20 }
  0xb1   :  { %v257_v32 = vmul.f32 %v416_v17, %v256_v39  ;;  %375 = vst [vmem:[#allocation5 + $0x20] sm:$0xff] %v355_v27   ;;  %v240_v12 = vmul.f32 %v412_v1, %v239_v28  ;;  %v230_v36 = vmul.f32 %v414_v46, %v229_v29  ;;  %vm263_vm15 = vmor %vm261_vm14, %vm262_vm12  ;;  %v279_v43 = vmul.f32 %v254_v51, %v536_v24 }
  0xb3   :  { %v258_v38 = vmul.f32 0.5, %v257_v32  ;;  %v244_v34 = vsel %vm243_vm9, %v412_v1, %v240_v12  ;;  %v234_v45 = vsel %vm233_vm11, %v414_v46, %v230_v36 }
  0xb4   :  { %v278_v31 = vmul.f32 %v244_v34, %v538_v25  ;;  %v277_v7 = vmul.f32 %v234_v45, %v540_v26 }
  0xb5   :  { %v259_v50 = vsub.f32 1.5, %v258_v38 }
  0xb6   :  { %v365_v40 = vpack.c.bf16 %v278_v31, %v277_v7 }
  0xb7   :  { %v260_v35 = vmul.f32 %v416_v17, %v259_v50 }
  0xb8   :  { %377 = vst [vmem:[#allocation5 + $0x30] sm:$0xff] %v365_v40  }
  0xb9   :  { %v264_v25 = vsel %vm263_vm15, %v416_v17, %v260_v35 }
  0xba   :  { %v280_v52 = vmul.f32 %v264_v25, %v548_v30 }
  0xbc   :  { %v370_v26 = vpack.c.bf16 %v280_v52, %v279_v43 }
  0xbe   :  { %378 = vst [vmem:[#allocation5 + $0x38] sm:$0xff] %v370_v26  }
  0xbf   :  { %325 = dma.vmem_to_hbm [thread:$0]  %s318_s13, 1024, %s320_s16, [#allocation4], %s473_s17, %s473_s17, %s474_s18  }
  0xc0   :  { %467 = dma.done.wait [#allocation4], 1024  }
  0xc1   :  { %468 = vsyncadd [#allocation4], 4294966272 }
  0xc2   :  { %330 = vsyncpa [#allocation3], 1 }
  0xc3   :  { %331 = vsyncpa [#allocation4], 1 }

</bundles_post_ra>
